<compile_context>
chip_gen: v7x
topology: tpu7x:2x2x1
jax: 0.10.0
libtpu: 0.0.40
codegen_flags: <defaults>
</compile_context>

<pallas_src>
import functools

import jax
import jax.numpy as jnp
from jax.experimental import pallas as pl
from jax.experimental.pallas import tpu as pltpu

ALPHA = 1.0
GAMMA = 2.0
LANES = 128
SUBLANES = 8


def _focal_loss_kernel(x_ref, t_ref, out_ref, acc_ref, *,
                       gamma, scale, tile_rows, tiles_per_split,
                       n_total, first_masked_block, needs_mask):
    c = pl.program_id(0)   # split axis ("parallel" -> megacore on multi-TC chips)
    i = pl.program_id(1)   # reduction axis ("arbitrary")

    @pl.when(i == 0)
    def _():
        acc_ref[...] = jnp.zeros_like(acc_ref)

    x = x_ref[...].astype(jnp.float32)
    t = t_ref[...].astype(jnp.float32)

    # Numerically stable BCE-with-logits (matches PyTorch):
    #   bce = max(x, 0) - x*t + log1p(exp(-|x|))
    bce = jnp.maximum(x, 0.0) - x * t + jnp.log1p(jnp.exp(-jnp.abs(x)))
    pt = jnp.exp(-bce)
    one_minus_pt = 1.0 - pt

    # (1 - pt) ** gamma : repeated multiplies for small integer gamma (VPU only);
    # float pow (EUP exp/log) only as a fallback for non-integer gamma.
    g = float(gamma)
    if g == 0.0:
        w = jnp.ones_like(one_minus_pt)
    elif g.is_integer() and 1.0 <= g <= 8.0:
        w = one_minus_pt
        for _ in range(int(g) - 1):
            w = w * one_minus_pt
    else:
        w = one_minus_pt ** g

    # alpha and 1/N are folded into the final scalar write ("scale").
    focal = w * bce

    def _block_reduce(v):
        # (tile_rows, 128) -> (8, 128): sublane-group tree of VPU adds, no XLU.
        return v.reshape(tile_rows // SUBLANES, SUBLANES, LANES).sum(axis=0)

    if needs_mask:
        block_idx = c * tiles_per_split + i

        @pl.when(block_idx >= first_masked_block)
        def _():
            # Only the final block(s) ever contain padded / out-of-bounds lanes.
            row0 = block_idx * tile_rows
            rows = jax.lax.broadcasted_iota(jnp.int32, (tile_rows, LANES), 0) + row0
            lanes = jax.lax.broadcasted_iota(jnp.int32, (tile_rows, LANES), 1)
            elem = rows * LANES + lanes      # NOTE: assumes n_total < 2**31
            acc_ref[...] += _block_reduce(jnp.where(elem < n_total, focal, 0.0))

        @pl.when(block_idx < first_masked_block)
        def _():
            acc_ref[...] += _block_reduce(focal)
    else:
        acc_ref[...] += _block_reduce(focal)

    # Single cross-lane/sublane XLU reduction per split, at the very end.
    @pl.when(i == pl.num_programs(1) - 1)
    def _():
        out_ref[...] = (jnp.sum(acc_ref[...]) * scale).reshape(1, 1)


def _default_num_splits():
    # Use both TensorCores only on multi-TC chips (v7x); on v5e/v6e a split
    # axis is just a sequential loop with extra bookkeeping.
    try:
        kind = jax.devices()[0].device_kind.lower()
        if "v7" in kind:
            return 2
    except Exception:
        pass
    return 1


def focal_loss(logits, targets, *, alpha=ALPHA, gamma=GAMMA,
               tile_rows=2048, num_splits=None):
    """Focal loss (mean reduced) over arbitrary-shaped logits/targets."""
    assert logits.shape == targets.shape
    n_total = int(logits.size)
    assert n_total > 0

    # Keep native dtypes across the HBM boundary; cast to f32 inside the kernel.
    flat_x = logits.reshape(-1)
    flat_t = targets.reshape(-1)

    # Minimal padding: only to the next (8 x 128)-element boundary, and only
    # when actually required (no extra HBM copy in the aligned common case).
    pad_unit = SUBLANES * LANES
    n_padded = -(-n_total // pad_unit) * pad_unit
    if n_padded != n_total:
        flat_x = jnp.pad(flat_x, (0, n_padded - n_total))
        flat_t = jnp.pad(flat_t, (0, n_padded - n_total))
    rows = n_padded // LANES                      # multiple of 8
    x2d = flat_x.reshape(rows, LANES)
    t2d = flat_t.reshape(rows, LANES)

    # Block: multiple of 8 sublanes, no larger than the (padded) array.
    eff_tile_rows = max(SUBLANES, (min(int(tile_rows), rows) // SUBLANES) * SUBLANES)
    total_tiles = pl.cdiv(rows, eff_tile_rows)    # last tile may overhang `rows`

    if num_splits is None:
        num_splits = _default_num_splits()
    if num_splits < 1 or total_tiles < num_splits or total_tiles % num_splits:
        num_splits = 1
    tps = total_tiles // num_splits

    block_elems = eff_tile_rows * LANES
    first_masked_block = n_total // block_elems
    needs_mask = total_tiles * block_elems > n_total

    kernel = functools.partial(
        _focal_loss_kernel,
        gamma=float(gamma),
        scale=float(alpha) / float(n_total),
        tile_rows=eff_tile_rows,
        tiles_per_split=int(tps),
        n_total=n_total,
        first_masked_block=int(first_masked_block),
        needs_mask=bool(needs_mask),
    )

    grid_elems = total_tiles * block_elems
    cost = pl.CostEstimate(
        flops=10 * grid_elems,
        transcendentals=3 * grid_elems,
        bytes_accessed=x2d.size * x2d.dtype.itemsize
        + t2d.size * t2d.dtype.itemsize
        + num_splits * 4,
    )

    partials = pl.pallas_call(
        kernel,
        out_shape=jax.ShapeDtypeStruct((num_splits, 1), jnp.float32),
        grid_spec=pltpu.PrefetchScalarGridSpec(
            num_scalar_prefetch=0,
            grid=(num_splits, tps),
            in_specs=[
                pl.BlockSpec((eff_tile_rows, LANES),
                             lambda c, i, _t=tps: (c * _t + i, 0)),
                pl.BlockSpec((eff_tile_rows, LANES),
                             lambda c, i, _t=tps: (c * _t + i, 0)),
            ],
            out_specs=pl.BlockSpec((1, 1), lambda c, i: (c, 0)),
            scratch_shapes=[pltpu.VMEM((SUBLANES, LANES), jnp.float32)],
        ),
        compiler_params=pltpu.CompilerParams(
            dimension_semantics=("parallel", "arbitrary"),
        ),
        cost_estimate=cost,
    )(x2d, t2d)

    # Per-split partials are already scaled by alpha/N; just sum them.
    return jnp.sum(partials)


def focal_loss_ref(logits, targets, alpha=ALPHA, gamma=GAMMA):
    x = logits.astype(jnp.float32)
    t = targets.astype(jnp.float32)
    bce = jnp.maximum(x, 0.0) - x * t + jnp.log1p(jnp.exp(-jnp.abs(x)))
    pt = jnp.exp(-bce)
    return jnp.mean(alpha * (1.0 - pt) ** gamma * bce)


if __name__ == "__main__":
    key = jax.random.PRNGKey(0)
    keys = jax.random.split(key, 8)

    # Case 1: size NOT a multiple of 1024 -> wrapper pad + masked last block.
    logits1 = jax.random.normal(keys[0], (16, 100), dtype=jnp.float32) * 2.0
    targets1 = (jax.random.uniform(keys[1], (16, 100)) > 0.5).astype(jnp.float32)
    out1 = jax.block_until_ready(focal_loss(logits1, targets1))
    ref1 = focal_loss_ref(logits1, targets1)
    assert jnp.allclose(out1, ref1, rtol=1e-5, atol=1e-6), (out1, ref1)

    # Case 2: 4-D input, size a multiple of 1024 -> no pad, no mask emitted.
    logits2 = jax.random.normal(keys[2], (2, 4, 16, 16), dtype=jnp.float32) * 2.0
    targets2 = (jax.random.uniform(keys[3], (2, 4, 16, 16)) > 0.5).astype(jnp.float32)
    out2 = jax.block_until_ready(focal_loss(logits2, targets2))
    ref2 = focal_loss_ref(logits2, targets2)
    assert jnp.allclose(out2, ref2, rtol=1e-5, atol=1e-6), (out2, ref2)

    # Case 3: multi-step grid, ragged (overhanging) last tile, SOFT targets.
    logits3 = jax.random.normal(keys[4], (3, 1000, 100), dtype=jnp.float32) * 2.0
    targets3 = jax.random.uniform(keys[5], (3, 1000, 100), dtype=jnp.float32)
    out3 = jax.block_until_ready(focal_loss(logits3, targets3))
    ref3 = focal_loss_ref(logits3, targets3)
    assert jnp.allclose(out3, ref3, rtol=1e-5, atol=1e-6), (out3, ref3)

    # Case 4: explicit 2-way split axis (sequential on 1-TC chips), small tiles.
    logits4 = jax.random.normal(keys[6], (4, 512, 128), dtype=jnp.float32) * 2.0
    targets4 = (jax.random.uniform(keys[7], (4, 512, 128)) > 0.5).astype(jnp.float32)
    out4 = jax.block_until_ready(
        focal_loss(logits4, targets4, tile_rows=256, num_splits=2))
    ref4 = focal_loss_ref(logits4, targets4)
    assert jnp.allclose(out4, ref4, rtol=1e-5, atol=1e-6), (out4, ref4)

    print("KERNEL_OK")
</pallas_src>

<mosaic_0001>
module attributes {stable_mosaic.version = 11 : i64} {
  func.func @_focal_loss_kernel(%arg0: i32, %arg1: i32, %arg2: memref<16x128xf32, #tpu.memory_space<vmem>>, %arg3: memref<16x128xf32, #tpu.memory_space<vmem>>, %arg4: memref<1x1xf32, #tpu.memory_space<vmem>>, %arg5: memref<8x128xf32, #tpu.memory_space<vmem>>) attributes {dimension_semantics = [#tpu.dimension_semantics<parallel>, #tpu.dimension_semantics<arbitrary>], iteration_bounds = array<i64: 1, 1>, scalar_prefetch = 0 : i64, scratch_operands = 1 : i64, tpu.core_type = #tpu.core_type<tc>, window_params = [{transform_indices = @transform_0, window_bounds = array<i64: 16, 128>}, {transform_indices = @transform_1, window_bounds = array<i64: 16, 128>}, {transform_indices = @transform_2, window_bounds = array<i64: 1, 1>}]} {
    %c0_i32 = arith.constant 0 : i32
    %0 = arith.cmpi eq, %arg1, %c0_i32 : i32
    %1 = arith.extui %0 : i1 to i32
    %c0_i32_0 = arith.constant 0 : i32
    %2 = arith.cmpi ne, %1, %c0_i32_0 : i32
    scf.if %2 {
      %cst_13 = arith.constant 0.000000e+00 : f32
      %33 = vector.broadcast %cst_13 : f32 to vector<8x128xf32>
      %c0_14 = arith.constant 0 : index
      %c0_15 = arith.constant 0 : index
      %34 = vector.load %arg5[%c0_14, %c0_15] : memref<8x128xf32, #tpu.memory_space<vmem>>, vector<8x128xf32>
      tpu.vector_store %arg5[%c0_14, %c0_15], %33 {strides = array<i32>} : memref<8x128xf32, #tpu.memory_space<vmem>>, vector<8x128xf32>,
    } else {
    }
    %c0 = arith.constant 0 : index
    %c0_1 = arith.constant 0 : index
    %3 = vector.load %arg2[%c0, %c0_1] : memref<16x128xf32, #tpu.memory_space<vmem>>, vector<16x128xf32>
    %c0_2 = arith.constant 0 : index
    %c0_3 = arith.constant 0 : index
    %4 = vector.load %arg3[%c0_2, %c0_3] : memref<16x128xf32, #tpu.memory_space<vmem>>, vector<16x128xf32>
    %cst = arith.constant 0.000000e+00 : f32
    %5 = vector.broadcast %cst : f32 to vector<16x128xf32>
    %6 = arith.maximumf %3, %5 : vector<16x128xf32>
    %7 = arith.mulf %3, %4 : vector<16x128xf32>
    %8 = arith.subf %6, %7 : vector<16x128xf32>
    %9 = math.absf %3 : vector<16x128xf32>
    %cst_4 = arith.constant 0.000000e+00 : f32
    %10 = vector.broadcast %cst_4 : f32 to vector<16x128xf32>
    %11 = arith.subf %10, %9 : vector<16x128xf32>
    %12 = math.exp %11 : vector<16x128xf32>
    %13 = math.log1p %12 : vector<16x128xf32>
    %14 = arith.addf %8, %13 : vector<16x128xf32>
    %cst_5 = arith.constant 0.000000e+00 : f32
    %15 = vector.broadcast %cst_5 : f32 to vector<16x128xf32>
    %16 = arith.subf %15, %14 : vector<16x128xf32>
    %17 = math.exp %16 : vector<16x128xf32>
    %cst_6 = arith.constant 1.000000e+00 : f32
    %18 = vector.broadcast %cst_6 : f32 to vector<16x128xf32>
    %19 = arith.subf %18, %17 : vector<16x128xf32>
    %20 = arith.mulf %19, %19 : vector<16x128xf32>
    %21 = arith.mulf %20, %14 : vector<16x128xf32>
    %c1_i32 = arith.constant 1 : i32
    %22 = arith.muli %arg0, %c1_i32 : i32
    %23 = arith.addi %22, %arg1 : i32
    %c0_i32_7 = arith.constant 0 : i32
    %24 = arith.cmpi sge, %23, %c0_i32_7 : i32
    %25 = arith.extui %24 : i1 to i32
    %c0_i32_8 = arith.constant 0 : i32
    %26 = arith.cmpi ne, %25, %c0_i32_8 : i32
    scf.if %26 {
      %c16_i32 = arith.constant 16 : i32
      %33 = arith.muli %23, %c16_i32 : i32
      %34 = tpu.iota {dimensions = array<i32: 0>} : vector<16x128xi32>
      %35 = vector.broadcast %33 : i32 to vector<16x128xi32>
      %36 = arith.addi %34, %35 : vector<16x128xi32>
      %37 = tpu.iota {dimensions = array<i32: 1>} : vector<16x128xi32>
      %c128_i32 = arith.constant 128 : i32
      %38 = vector.broadcast %c128_i32 : i32 to vector<16x128xi32>
      %39 = arith.muli %36, %38 : vector<16x128xi32>
      %40 = arith.addi %39, %37 : vector<16x128xi32>
      %c0_13 = arith.constant 0 : index
      %c0_14 = arith.constant 0 : index
      %41 = vector.load %arg5[%c0_13, %c0_14] : memref<8x128xf32, #tpu.memory_space<vmem>>, vector<8x128xf32>
      %c1600_i32 = arith.constant 1600 : i32
      %42 = vector.broadcast %c1600_i32 : i32 to vector<16x128xi32>
      %43 = arith.cmpi slt, %40, %42 : vector<16x128xi32>
      %cst_15 = arith.constant 0.000000e+00 : f32
      %44 = vector.broadcast %cst_15 : f32 to vector<16x128xf32>
      %45 = arith.select %43, %21, %44 : vector<16x128xi1>, vector<16x128xf32>
      %46 = vector.shape_cast %45 : vector<16x128xf32> to vector<2x8x128xf32>
      %cst_16 = arith.constant dense<0.000000e+00> : vector<8x128xf32>
      %47 = vector.multi_reduction <add>, %46, %cst_16 [0] : vector<2x8x128xf32> to vector<8x128xf32>
      %48 = arith.addf %41, %47 : vector<8x128xf32>
      %c0_17 = arith.constant 0 : index
      %c0_18 = arith.constant 0 : index
      %49 = vector.load %arg5[%c0_17, %c0_18] : memref<8x128xf32, #tpu.memory_space<vmem>>, vector<8x128xf32>
      tpu.vector_store %arg5[%c0_17, %c0_18], %48 {strides = array<i32>} : memref<8x128xf32, #tpu.memory_space<vmem>>, vector<8x128xf32>,
    } else {
    }
    %c0_i32_9 = arith.constant 0 : i32
    %27 = arith.cmpi slt, %23, %c0_i32_9 : i32
    %28 = arith.extui %27 : i1 to i32
    %c0_i32_10 = arith.constant 0 : i32
    %29 = arith.cmpi ne, %28, %c0_i32_10 : i32
    scf.if %29 {
      %c0_13 = arith.constant 0 : index
      %c0_14 = arith.constant 0 : index
      %33 = vector.load %arg5[%c0_13, %c0_14] : memref<8x128xf32, #tpu.memory_space<vmem>>, vector<8x128xf32>
      %34 = vector.shape_cast %21 : vector<16x128xf32> to vector<2x8x128xf32>
      %cst_15 = arith.constant dense<0.000000e+00> : vector<8x128xf32>
      %35 = vector.multi_reduction <add>, %34, %cst_15 [0] : vector<2x8x128xf32> to vector<8x128xf32>
      %36 = arith.addf %33, %35 : vector<8x128xf32>
      %c0_16 = arith.constant 0 : index
      %c0_17 = arith.constant 0 : index
      %37 = vector.load %arg5[%c0_16, %c0_17] : memref<8x128xf32, #tpu.memory_space<vmem>>, vector<8x128xf32>
      tpu.vector_store %arg5[%c0_16, %c0_17], %36 {strides = array<i32>} : memref<8x128xf32, #tpu.memory_space<vmem>>, vector<8x128xf32>,
    } else {
    }
    %c0_i32_11 = arith.constant 0 : i32
    %30 = arith.cmpi eq, %arg1, %c0_i32_11 : i32
    %31 = arith.extui %30 : i1 to i32
    %c0_i32_12 = arith.constant 0 : i32
    %32 = arith.cmpi ne, %31, %c0_i32_12 : i32
    scf.if %32 {
      %c0_13 = arith.constant 0 : index
      %c0_14 = arith.constant 0 : index
      %33 = vector.load %arg5[%c0_13, %c0_14] : memref<8x128xf32, #tpu.memory_space<vmem>>, vector<8x128xf32>
      %34 = vector.shape_cast %33 : vector<8x128xf32> to vector<1x8x128xf32>
      %cst_15 = arith.constant dense<0.000000e+00> : vector<1xf32>
      %35 = vector.multi_reduction <add>, %34, %cst_15 [1, 2] : vector<1x8x128xf32> to vector<1xf32>
      %36 = vector.shape_cast %35 : vector<1xf32> to vector<1x1x1xf32>
      %37 = vector.extract %36[0, 0, 0] : f32 from vector<1x1x1xf32>
      %cst_16 = arith.constant 6.250000e-04 : f32
      %38 = arith.mulf %37, %cst_16 : f32
      %39 = vector.broadcast %38 : f32 to vector<1x1xf32>
      %c0_17 = arith.constant 0 : index
      %c0_18 = arith.constant 0 : index
      %40 = vector.load %arg4[%c0_17, %c0_18] : memref<1x1xf32, #tpu.memory_space<vmem>>, vector<1x1xf32>
      tpu.vector_store %arg4[%c0_17, %c0_18], %39 {strides = array<i32>} : memref<1x1xf32, #tpu.memory_space<vmem>>, vector<1x1xf32>,
    } else {
    }
    return
  }
  func.func @transform_0(%arg0: i32, %arg1: i32) -> (i32, i32) {
    %c1_i32 = arith.constant 1 : i32
    %0 = arith.muli %arg0, %c1_i32 : i32
    %1 = arith.addi %0, %arg1 : i32
    %c0_i32 = arith.constant 0 : i32
    %c0_i32_0 = arith.constant 0 : i32
    return %1, %c0_i32 : i32, i32
  }
  func.func @transform_1(%arg0: i32, %arg1: i32) -> (i32, i32) {
    %c1_i32 = arith.constant 1 : i32
    %0 = arith.muli %arg0, %c1_i32 : i32
    %1 = arith.addi %0, %arg1 : i32
    %c0_i32 = arith.constant 0 : i32
    %c0_i32_0 = arith.constant 0 : i32
    return %1, %c0_i32 : i32, i32
  }
  func.func @transform_2(%arg0: i32, %arg1: i32) -> (i32, i32) {
    %c0_i32 = arith.constant 0 : i32
    %c0_i32_0 = arith.constant 0 : i32
    return %arg0, %c0_i32 : i32, i32
  }
}

</mosaic_0001>

<bundles_post_ra>
// kernel: tpu_custom_call.1
= control target key start
LH: loop header
LB: loop body
LE: loop exit
PB: predicated region body
PF: predicated region fallthrough
CT: control target
= control target key end

     0   :  { %7 = vsyncpa [#allocation4], 0  ;;  %s321_s0 = inlined_call_operand.hbm [shape: f32[16,128], index: 0, kind: input, shape index: {}]   ;;  %s322_s1 = inlined_call_operand.hbm [shape: f32[16,128], index: 1, kind: input, shape index: {}]   ;;  %s323_s2 = inlined_call_operand.hbm [shape: f32[1,1], index: 2, kind: output, shape index: {}]  }
   0x1   :  { %8 = vsyncpa [#allocation7], 0 }
   0x2   :  { %9 = vsyncpa [#allocation5], 0  ;;  %s265_s9 = smov [#allocation3]   ;;  %s193_s13 = scalar_lea.hbm %s321_s0, 256 }
   0x3   :  { %s19_s10 = sshll.u32 %s265_s9, 4  ;;  %p194_p0 = scmp.ne.s32.totalorder %s321_s0, %s193_s13  ;;  %s20_s10 = int_to_ptr.vmem [resolvable:$true] %s19_s10 }
   0x4   :  { %p197_p1 = scmp.lt.u32.totalorder %s193_s13, %s321_s0 }
   0x6   :  { %p199_p2 = pnand %p197_p1, %p194_p0 }
   0x8   :  { %202 = shalt.err (!%p199_p2)
}
   0x9   :  { %s203_s18 = scalar_lea.vmem %s20_s10, 256  ;;  %p208_p4 = scmp.lt.s32.totalorder %s20_s10, %s20_s10 }
   0xa   :  { %p204_p3 = scmp.ne.s32.totalorder %s20_s10, %s203_s18  ;;  %p209_p5 = scmp.lt.s32.totalorder %s203_s18, %s203_s18 }
   0xc   :  { %p210_p6 = por %p209_p5, %p208_p4 }
   0xe   :  { %p211_p7 = pnand %p210_p6, %p204_p3 }
  0x10   :  { %214 = shalt.err (!%p211_p7)
}
  0x11   :  { %s266_s19 = smov 128   ;;  %s267_s20 = smov 8  }
  0x12   :  { %25 = dma.hbm_to_vmem [thread:$0]  %s321_s0, 256, %s20_s10, [#allocation4], %s266_s19, %s266_s19, %s267_s20  }
  0x13   :  { %s268_s23 = smov [#allocation6]   ;;  %s215_s27 = scalar_lea.hbm %s322_s1, 256 }
  0x14   :  { %s35_s24 = sshll.u32 %s268_s23, 4  ;;  %p216_p8 = scmp.ne.s32.totalorder %s322_s1, %s215_s27  ;;  %s36_s24 = int_to_ptr.vmem [resolvable:$true] %s35_s24 }
  0x15   :  { %p219_p9 = scmp.lt.u32.totalorder %s215_s27, %s322_s1 }
  0x17   :  { %p221_p10 = pnand %p219_p9, %p216_p8 }
  0x19   :  { %224 = shalt.err (!%p221_p10)
}
  0x1a   :  { %s225_s4 = scalar_lea.vmem %s36_s24, 256  ;;  %p230_p12 = scmp.lt.s32.totalorder %s36_s24, %s36_s24 }
  0x1b   :  { %p226_p11 = scmp.ne.s32.totalorder %s36_s24, %s225_s4  ;;  %p231_p13 = scmp.lt.s32.totalorder %s225_s4, %s225_s4 }
  0x1d   :  { %p232_p0 = por %p231_p13, %p230_p12 }
  0x1f   :  { %p233_p1 = pnand %p232_p0, %p226_p11 }
  0x21   :  { %236 = shalt.err (!%p233_p1)
}
  0x22   :  { %41 = dma.hbm_to_vmem [thread:$0]  %s322_s1, 256, %s36_s24, [#allocation7], %s266_s19, %s266_s19, %s267_s20  }
  0x23   :  { %259 = dma.done.wait [#allocation4], 256  }
  0x24   :  { %260 = vsyncadd [#allocation4], 4294967040 }
  0x25   :  { %261 = dma.done.wait [#allocation7], 256  }
  0x26   :  { %262 = vsyncadd [#allocation7], 4294967040  ;;  %v57_v0 = vld [vmem:[#allocation3] sm:$0xff]  ;;  %v58_v1 = vld [vmem:[#allocation3 + $0x8] sm:$0xff]  ;;  %v113_v36 = vlaneseq  ;;  %s269_s1 = smov [#allocation8]   ;;  %vm156_vm4 = vcmask 0  }
  0x27   :  { %v67_v2 = vand.u32 2147483647, %v57_v0  ;;  %v68_v3 = vand.u32 2147483647, %v58_v1  ;;  %v59_v14 = vld [vmem:[#allocation6] sm:$0xff]  ;;  %v60_v15 = vld [vmem:[#allocation6 + $0x8] sm:$0xff] }
  0x28   :  { %v61_v17 = vmax.f32 %v57_v0, 0.0  ;;  %v63_v18 = vmul.f32 %v59_v14, %v57_v0  ;;  %v62_v21 = vmax.f32 %v58_v1, 0.0  ;;  %v64_v22 = vmul.f32 %v60_v15, %v58_v1  ;;  %s164_s6 = sshll.u32 %s269_s1, 4  ;;  %s165_s6 = int_to_ptr.vmem [resolvable:$true] %s164_s6 }
  0x29   :  { %v69_v4 = vsub.f32 0.0, %v67_v2  ;;  %v70_v5 = vsub.f32 0.0, %v68_v3  ;;  %v114_v41 = vshrl.u32 %v113_v36, 7  ;;  %v120_v43 = vand.u32 127, %v113_v36  ;;  %s237_s9 = scalar_lea.vmem %s165_s6, 16  ;;  %s241_s10 = scalar_lea.vmem %s165_s6, 32 }
  0x2a   :  { %v65_v26 = vsub.f32 %v61_v17, %v63_v18  ;;  %v66_v29 = vsub.f32 %v62_v21, %v64_v22  ;;  %p238_p2 = scmp.ne.s32.totalorder %s165_s6, %s237_s9  ;;  %p242_p3 = scmp.lt.s32.totalorder %s165_s6, %s165_s6 }
  0x2b   :  { %v71_v6 = vmul.f32 1.442695, %v69_v4  ;;  %v73_v7 = vmul.f32 1.442695, %v70_v5  ;;  %v115_v42 = vadd.s32 8, %v114_v41  ;;  %v121_v44 = vmul.u32 128, %v114_v41  ;;  %p243_p4 = scmp.lt.s32.totalorder %s241_s10, %s237_s9 }
  0x2d   :  { %181 = vpow2.f32 %v71_v6  ;;  %v122_v45 = vmul.u32 128, %v115_v42  ;;  %v123_v47 = vadd.s32 %v121_v44, %v120_v43  ;;  %p244_p5 = por %p243_p4, %p242_p3 }
  0x2e   :  { %183 = vpow2.f32 %v73_v7 }
  0x2f   :  { %v124_v50 = vadd.s32 %v122_v45, %v120_v43  ;;  %vm126_vm2 = vcmp.lt.s32.totalorder %v123_v47, 1600  ;;  %p245_p6 = pnand %p244_p5, %p238_p2 }
  0x31   :  { %vm127_vm3 = vcmp.lt.s32.totalorder %v124_v50, 1600 }
  0x37   :  { %v182_v8 = vpop.eup %181 }
  0x38   :  { %v184_v9 = vpop.eup %183  ;;  %v75_v10 = vadd.f32 1.0, %v182_v8  ;;  %v78_v12 = vmul.f32 -0.5, %v182_v8  ;;  %v81_v19 = vand.u32 2147483647, %v182_v8 }
  0x39   :  { %v84_v11 = vadd.f32 1.0, %v184_v9  ;;  %v87_v13 = vmul.f32 -0.5, %v184_v9  ;;  %v90_v23 = vand.u32 2147483647, %v184_v9 }
  0x3a   :  { %185 = vlog2.f32 %v75_v10  ;;  %v79_v16 = vadd.f32 1.0, %v78_v12  ;;  %vm82_vm0 = vcmp.lt.f32.partialorder %v81_v19, 0.0004427343 }
  0x3b   :  { %187 = vlog2.f32 %v84_v11  ;;  %v88_v20 = vadd.f32 1.0, %v87_v13  ;;  %vm91_vm1 = vcmp.lt.f32.partialorder %v90_v23, 0.0004427343 }
  0x3c   :  { %v80_v24 = vmul.f32 %v182_v8, %v79_v16 }
  0x3d   :  { %v89_v27 = vmul.f32 %v184_v9, %v88_v20 }
  0x44   :  { %v186_v25 = vpop.eup %185 }
  0x45   :  { %v188_v28 = vpop.eup %187  ;;  %v77_v30 = vmul.f32 0.6931472, %v186_v25 }
  0x46   :  { %v86_v31 = vmul.f32 0.6931472, %v188_v28 }
  0x47   :  { %v83_v32 = vsel %vm82_vm0, %v80_v24, %v77_v30 }
  0x48   :  { %v92_v33 = vsel %vm91_vm1, %v89_v27, %v86_v31  ;;  %v93_v34 = vadd.f32 %v83_v32, %v65_v26 }
  0x49   :  { %v94_v35 = vadd.f32 %v92_v33, %v66_v29 }
  0x4a   :  { %v95_v37 = vsub.f32 0.0, %v93_v34 }
  0x4b   :  { %v96_v38 = vsub.f32 0.0, %v94_v35 }
  0x4c   :  { %v97_v39 = vmul.f32 1.442695, %v95_v37 }
  0x4d   :  { %v99_v40 = vmul.f32 1.442695, %v96_v38 }
  0x4e   :  { %189 = vpow2.f32 %v97_v39 }
  0x4f   :  { %191 = vpow2.f32 %v99_v40 }
  0x58   :  { %v190_v46 = vpop.eup %189 }
  0x59   :  { %v192_v48 = vpop.eup %191  ;;  %v101_v49 = vsub.f32 1.0, %v190_v46 }
  0x5a   :  { %v102_v51 = vsub.f32 1.0, %v192_v48 }
  0x5b   :  { %v103_v52 = vmul.f32 %v101_v49, %v101_v49 }
  0x5c   :  { %v104_v53 = vmul.f32 %v102_v51, %v102_v51 }
  0x5d   :  { %v105_v54 = vmul.f32 %v103_v52, %v93_v34 }
  0x5e   :  { %v106_v55 = vmul.f32 %v104_v53, %v94_v35 }
  0x5f   :  { %v128_v56 = vsel %vm126_vm2, %v105_v54, 0.0 }
  0x60   :  { %v129_v57 = vsel %vm127_vm3, %v106_v55, 0.0 }
  0x61   :  { %v130_v58 = vadd.f32 %v129_v57, %v128_v56 }
  0x63   :  { %145 = vadd.xlane.f32.xlu0 %v130_v58 }
  0xf0   :  { %v146_v59 = vpop.xlane.xlu0 %145 }
  0xf1   :  { %v147_v60 = vrot.slane %v146_v59, 4 }
  0xf3   :  { %v148_v61 = vadd.f32 %v147_v60, %v146_v59 }
  0xf5   :  { %v149_v62 = vrot.slane %v148_v61, 2 }
  0xf7   :  { %v150_v63 = vadd.f32 %v149_v62, %v148_v61 }
  0xf9   :  { %v151_v0 = vrot.slane %v150_v63, 1 }
  0xfb   :  { %v152_v1 = vadd.f32 %v151_v0, %v150_v63 }
  0xfd   :  { %174 = vpush %v152_v1 }
 0x12e   :  { %s175_s7 = spop %174 }
 0x12f   :  { %s154_s8 = smul.f32 0.000625, %s175_s7 }
 0x131   :  { %v155_v2 = vstv %s154_s8 }
 0x132   :  { %157 = vst.msk [vmem:[#allocation8] sm:$0x1] %vm156_vm4, %v155_v2 }
 0x133   :  { %248 = shalt.err (!%p245_p6)
}
 0x134   :  { %s249_s13 = scalar_lea.hbm %s323_s2, 16 }
 0x135   :  { %p250_p7 = scmp.ne.s32.totalorder %s323_s2, %s249_s13  ;;  %p253_p8 = scmp.lt.u32.totalorder %s249_s13, %s323_s2 }
 0x137   :  { %p255_p9 = pnand %p253_p8, %p250_p7 }
 0x139   :  { %258 = shalt.err (!%p255_p9)
}
 0x13a   :  { %167 = dma.vmem_to_hbm [thread:$0]  %s165_s6, 16, %s323_s2, [#allocation5]  }
 0x13b   :  { %263 = dma.done.wait [#allocation5], 16  }
 0x13c   :  { %264 = vsyncadd [#allocation5], 4294967280 }
 0x13d   :  { %171 = vsyncpa [#allocation4], 1 }
 0x13e   :  { %172 = vsyncpa [#allocation7], 1 }
 0x13f   :  { %173 = vsyncpa [#allocation5], 1 }

</bundles_post_ra>
